<compile_context>
chip_gen: v7x
topology: tpu7x:2x2x1
jax: 0.10.0
libtpu: 0.0.40
codegen_flags: <defaults>
</compile_context>

<pallas_src>
import jax
import jax.numpy as jnp
from jax.experimental import pallas as pl
from jax.experimental.pallas import tpu as pltpu


# ----------------------------- Pallas kernel -------------------------------
def _attention_kernel(x_ref, h_ref, wl_ref, wh_ref, b_ref, wj_ref, out_ref):
    # Per grid step (one batch element):
    #   x_ref  : (S, D)   latent rows
    #   h_ref  : (1, H)   hidden state
    #   wl_ref : (D, Ap)  W_latent^T (lane-padded)
    #   wh_ref : (H, Ap)  W_hidden^T (lane-padded)
    #   b_ref  : (1, Ap)  bl + bh    (lane-padded)
    #   wj_ref : (1, Ap)  W_joint row (lane-padded)
    #   out_ref: (S, 1)   softmax weights for this batch row
    lat = jnp.dot(x_ref[...], wl_ref[...], preferred_element_type=jnp.float32)  # (S, Ap)
    hid = jnp.dot(h_ref[...], wh_ref[...], preferred_element_type=jnp.float32)  # (1, Ap)

    # relu(latent + hidden + (bl + bh)); hidden/bias broadcast over the seq axis.
    z = jnp.maximum(lat + hid + b_ref[...], 0.0)                                # (S, Ap)

    # Joint projection has out_features == 1: VPU multiply + XLU lane reduce
    # beats a lane-sparse matmul. b_joint omitted (softmax shift invariance).
    logits = jnp.sum(z * wj_ref[...], axis=-1, keepdims=True)                   # (S, 1)

    # Softmax over the sequence axis (sublane axis here).
    m = jnp.max(logits, axis=0, keepdims=True)
    e = jnp.exp(logits - m)
    denom = jnp.sum(e, axis=0, keepdims=True)
    out_ref[...] = e * pl.reciprocal(denom, approx=False)


# ------------------------------- Wrappers ------------------------------------
def _round_up(n, m):
    return (n + m - 1) // m * m


def prepare_attention_params(params):
    """One-time weight prep (transpose + lane padding). Run at init, not per call."""
    wl, bl, wh, bh, wj, bj = params
    A = wl.shape[0]
    Ap = _round_up(max(A, 128), 128)
    pad = Ap - A
    wl_t = jnp.pad(jnp.transpose(wl).astype(jnp.float32), ((0, 0), (0, pad)))     # (D, Ap)
    wh_t = jnp.pad(jnp.transpose(wh).astype(jnp.float32), ((0, 0), (0, pad)))     # (H, Ap)
    b_row = jnp.pad((bl + bh).astype(jnp.float32)[None, :], ((0, 0), (0, pad)))   # (1, Ap)
    wj_row = jnp.pad(wj.astype(jnp.float32).reshape(1, A), ((0, 0), (0, pad)))    # (1, Ap)
    # b_joint intentionally dropped: softmax(x + c) == softmax(x).
    return wl_t, wh_t, b_row, wj_row


def attention_forward(latent_repr, hidden_repr, prepared):
    """Pallas equivalent of Attention.forward(latent_repr, hidden_repr)."""
    wl_t, wh_t, b_row, wj_row = prepared
    B, S, D = latent_repr.shape
    H = wh_t.shape[0]
    Ap = wl_t.shape[1]

    if hidden_repr is None:
        h_t = jnp.zeros((B, 1, H), jnp.float32)
    else:
        h_t = hidden_repr[0].astype(jnp.float32).reshape(B, 1, H)

    x = latent_repr.astype(jnp.float32)

    out = pl.pallas_call(
        _attention_kernel,
        out_shape=jax.ShapeDtypeStruct((B, S, 1), jnp.float32),
        grid_spec=pltpu.PrefetchScalarGridSpec(
            num_scalar_prefetch=0,
            grid=(B,),  # one batch element per step; "parallel" -> megacore split on v7x
            in_specs=[
                pl.BlockSpec((None, S, D), lambda b: (b, 0, 0)),  # latent rows (per batch)
                pl.BlockSpec((None, 1, H), lambda b: (b, 0, 0)),  # hidden state (per batch)
                pl.BlockSpec((D, Ap), lambda b: (0, 0)),          # W_latent^T (resident)
                pl.BlockSpec((H, Ap), lambda b: (0, 0)),          # W_hidden^T (resident)
                pl.BlockSpec((1, Ap), lambda b: (0, 0)),          # bl + bh    (resident)
                pl.BlockSpec((1, Ap), lambda b: (0, 0)),          # W_joint row (resident)
            ],
            out_specs=pl.BlockSpec((None, S, 1), lambda b: (b, 0, 0)),
        ),
        compiler_params=pltpu.CompilerParams(
            dimension_semantics=("parallel",),
            vmem_limit_bytes=32 * 1024 * 1024,
        ),
    )(x, h_t, wl_t, wh_t, b_row, wj_row)
    # (B, S, 1) -> (B, S): contiguous squeeze, free in XLA.
    return out.reshape(B, S)


# ----------------------- Params (PyTorch Linear-like) ------------------------
def init_attention_params(key, latent_dim, hidden_dim, attention_dim):
    def linear(k, in_f, out_f):
        k1, k2 = jax.random.split(k)
        bound = 1.0 / float(in_f) ** 0.5
        w = jax.random.uniform(k1, (out_f, in_f), jnp.float32, -bound, bound)
        b = jax.random.uniform(k2, (out_f,), jnp.float32, -bound, bound)
        return w, b

    k1, k2, k3 = jax.random.split(key, 3)
    wl, bl = linear(k1, latent_dim, attention_dim)
    wh, bh = linear(k2, hidden_dim, attention_dim)
    wj, bj = linear(k3, attention_dim, 1)
    return wl, bl, wh, bh, wj, bj


# --------------------------- Pure-JAX reference ------------------------------
def attention_forward_ref(latent_repr, hidden_repr, params):
    wl, bl, wh, bh, wj, bj = params
    B = latent_repr.shape[0]
    H = wh.shape[1]
    if hidden_repr is None:
        h_t = jnp.zeros((B, 1, H), jnp.float32)
    else:
        h_t = hidden_repr[0]
    lat = latent_repr @ wl.T + bl                  # (B, S, A)
    hid = h_t @ wh.T + bh                          # (B, 1, A)
    z = jax.nn.relu(lat + hid)
    logits = (z @ wj.T + bj)[..., 0]               # (B, S)
    return jax.nn.softmax(logits, axis=-1)


# --------------------------------- Main --------------------------------------
if __name__ == "__main__":
    # Module config (constructor args of Attention)
    latent_dim = 32
    hidden_dim = 32
    attention_dim = 64

    batch, seq = 2, 8

    key = jax.random.PRNGKey(0)
    kx, kh, kp = jax.random.split(key, 3)
    latent_repr = jax.random.normal(kx, (batch, seq, latent_dim), jnp.float32)
    h_t = jax.random.normal(kh, (batch, 1, hidden_dim), jnp.float32)
    hidden_repr = [h_t]
    params = init_attention_params(kp, latent_dim, hidden_dim, attention_dim)

    # One-time weight prep (hoisted out of the forward path).
    prepared = prepare_attention_params(params)

    out = jax.block_until_ready(attention_forward(latent_repr, hidden_repr, prepared))
    assert out.shape == (batch, seq), out.shape

    ref = jax.block_until_ready(attention_forward_ref(latent_repr, hidden_repr, params))
    assert jnp.allclose(out, ref, rtol=1e-4, atol=1e-4), float(jnp.max(jnp.abs(out - ref)))

    # Also exercise the hidden_repr=None path (zeros hidden state).
    out_none = jax.block_until_ready(attention_forward(latent_repr, None, prepared))
    ref_none = jax.block_until_ready(attention_forward_ref(latent_repr, None, params))
    assert jnp.allclose(out_none, ref_none, rtol=1e-4, atol=1e-4)

    print("KERNEL_OK")
</pallas_src>

<mosaic_0001>
module attributes {stable_mosaic.version = 11 : i64} {
  func.func @_attention_kernel(%arg0: i32, %arg1: memref<1x8x32xf32, #tpu.memory_space<vmem>>, %arg2: memref<1x1x32xf32, #tpu.memory_space<vmem>>, %arg3: memref<32x128xf32, #tpu.memory_space<vmem>>, %arg4: memref<32x128xf32, #tpu.memory_space<vmem>>, %arg5: memref<1x128xf32, #tpu.memory_space<vmem>>, %arg6: memref<1x128xf32, #tpu.memory_space<vmem>>, %arg7: memref<1x8x1xf32, #tpu.memory_space<vmem>>) attributes {dimension_semantics = [#tpu.dimension_semantics<parallel>], iteration_bounds = array<i64: 2>, scalar_prefetch = 0 : i64, scratch_operands = 0 : i64, tpu.core_type = #tpu.core_type<tc>, window_params = [{transform_indices = @transform_0, window_bounds = array<i64: 1, 8, 32>}, {transform_indices = @transform_1, window_bounds = array<i64: 1, 1, 32>}, {pipeline_mode = #tpu.pipeline_mode<synchronous>, transform_indices = @transform_2, window_bounds = array<i64: 32, 128>}, {pipeline_mode = #tpu.pipeline_mode<synchronous>, transform_indices = @transform_3, window_bounds = array<i64: 32, 128>}, {pipeline_mode = #tpu.pipeline_mode<synchronous>, transform_indices = @transform_4, window_bounds = array<i64: 1, 128>}, {pipeline_mode = #tpu.pipeline_mode<synchronous>, transform_indices = @transform_5, window_bounds = array<i64: 1, 128>}, {transform_indices = @transform_6, window_bounds = array<i64: 1, 8, 1>}]} {
    %c0 = arith.constant 0 : index
    %c0_0 = arith.constant 0 : index
    %c0_1 = arith.constant 0 : index
    %0 = vector.load %arg1[%c0, %c0_0, %c0_1] : memref<1x8x32xf32, #tpu.memory_space<vmem>>, vector<1x8x32xf32>
    %1 = vector.shape_cast %0 : vector<1x8x32xf32> to vector<8x32xf32>
    %c0_2 = arith.constant 0 : index
    %c0_3 = arith.constant 0 : index
    %2 = vector.load %arg3[%c0_2, %c0_3] : memref<32x128xf32, #tpu.memory_space<vmem>>, vector<32x128xf32>
    %cst = arith.constant dense<0.000000e+00> : vector<8x128xf32>
    %3 = tpu.matmul %1, %2, %cst {dimension_numbers = #tpu.dot_dimension_numbers<[1], [0], [0], [1], [0, 0, 1, 1], [], []>} : vector<8x32xf32>, vector<32x128xf32>, vector<8x128xf32> -> vector<8x128xf32>
    %c0_4 = arith.constant 0 : index
    %c0_5 = arith.constant 0 : index
    %c0_6 = arith.constant 0 : index
    %4 = vector.load %arg2[%c0_4, %c0_5, %c0_6] : memref<1x1x32xf32, #tpu.memory_space<vmem>>, vector<1x1x32xf32>
    %5 = vector.shape_cast %4 : vector<1x1x32xf32> to vector<1x32xf32>
    %c0_7 = arith.constant 0 : index
    %c0_8 = arith.constant 0 : index
    %6 = vector.load %arg4[%c0_7, %c0_8] : memref<32x128xf32, #tpu.memory_space<vmem>>, vector<32x128xf32>
    %cst_9 = arith.constant dense<0.000000e+00> : vector<1x128xf32>
    %7 = tpu.matmul %5, %6, %cst_9 {dimension_numbers = #tpu.dot_dimension_numbers<[1], [0], [0], [1], [0, 0, 1, 1], [], []>} : vector<1x32xf32>, vector<32x128xf32>, vector<1x128xf32> -> vector<1x128xf32>
    %8 = vector.broadcast %7 : vector<1x128xf32> to vector<8x128xf32>
    %9 = arith.addf %3, %8 : vector<8x128xf32>
    %c0_10 = arith.constant 0 : index
    %c0_11 = arith.constant 0 : index
    %10 = vector.load %arg5[%c0_10, %c0_11] : memref<1x128xf32, #tpu.memory_space<vmem>>, vector<1x128xf32>
    %11 = vector.broadcast %10 : vector<1x128xf32> to vector<8x128xf32>
    %12 = arith.addf %9, %11 : vector<8x128xf32>
    %cst_12 = arith.constant 0.000000e+00 : f32
    %13 = vector.broadcast %cst_12 : f32 to vector<8x128xf32>
    %14 = arith.maximumf %12, %13 : vector<8x128xf32>
    %c0_13 = arith.constant 0 : index
    %c0_14 = arith.constant 0 : index
    %15 = vector.load %arg6[%c0_13, %c0_14] : memref<1x128xf32, #tpu.memory_space<vmem>>, vector<1x128xf32>
    %16 = vector.broadcast %15 : vector<1x128xf32> to vector<8x128xf32>
    %17 = arith.mulf %14, %16 : vector<8x128xf32>
    %cst_15 = arith.constant dense<0.000000e+00> : vector<8xf32>
    %18 = vector.multi_reduction <add>, %17, %cst_15 [1] : vector<8x128xf32> to vector<8xf32>
    %19 = vector.shape_cast %18 : vector<8xf32> to vector<8x1xf32>
    %cst_16 = arith.constant dense<0xFF800000> : vector<1xf32>
    %20 = vector.multi_reduction <maximumf>, %19, %cst_16 [0] : vector<8x1xf32> to vector<1xf32>
    %21 = vector.shape_cast %20 : vector<1xf32> to vector<1x1xf32>
    %22 = vector.broadcast %21 : vector<1x1xf32> to vector<8x1xf32>
    %23 = arith.subf %19, %22 : vector<8x1xf32>
    %24 = math.exp %23 : vector<8x1xf32>
    %cst_17 = arith.constant dense<0.000000e+00> : vector<1xf32>
    %25 = vector.multi_reduction <add>, %24, %cst_17 [0] : vector<8x1xf32> to vector<1xf32>
    %26 = vector.shape_cast %25 : vector<1xf32> to vector<1x1xf32>
    %27 = tpu.reciprocal %26 : vector<1x1xf32> -> vector<1x1xf32>
    %28 = vector.broadcast %27 : vector<1x1xf32> to vector<8x1xf32>
    %29 = arith.mulf %24, %28 : vector<8x1xf32>
    %c0_18 = arith.constant 0 : index
    %c0_19 = arith.constant 0 : index
    %c0_20 = arith.constant 0 : index
    %30 = vector.load %arg7[%c0_18, %c0_19, %c0_20] : memref<1x8x1xf32, #tpu.memory_space<vmem>>, vector<1x8x1xf32>
    %31 = vector.shape_cast %30 : vector<1x8x1xf32> to vector<8x1xf32>
    %32 = vector.shape_cast %29 : vector<8x1xf32> to vector<1x8x1xf32>
    tpu.vector_store %arg7[%c0_18, %c0_19, %c0_20], %32 {strides = array<i32>} : memref<1x8x1xf32, #tpu.memory_space<vmem>>, vector<1x8x1xf32>,
    return
  }
  func.func @transform_0(%arg0: i32) -> (i32, i32, i32) {
    %c0_i32 = arith.constant 0 : i32
    %c0_i32_0 = arith.constant 0 : i32
    %c0_i32_1 = arith.constant 0 : i32
    return %arg0, %c0_i32, %c0_i32_0 : i32, i32, i32
  }
  func.func @transform_1(%arg0: i32) -> (i32, i32, i32) {
    %c0_i32 = arith.constant 0 : i32
    %c0_i32_0 = arith.constant 0 : i32
    %c0_i32_1 = arith.constant 0 : i32
    return %arg0, %c0_i32, %c0_i32_0 : i32, i32, i32
  }
  func.func @transform_2(%arg0: i32) -> (i32, i32) {
    %c0_i32 = arith.constant 0 : i32
    %c0_i32_0 = arith.constant 0 : i32
    %c0_i32_1 = arith.constant 0 : i32
    return %c0_i32, %c0_i32_0 : i32, i32
  }
  func.func @transform_3(%arg0: i32) -> (i32, i32) {
    %c0_i32 = arith.constant 0 : i32
    %c0_i32_0 = arith.constant 0 : i32
    %c0_i32_1 = arith.constant 0 : i32
    return %c0_i32, %c0_i32_0 : i32, i32
  }
  func.func @transform_4(%arg0: i32) -> (i32, i32) {
    %c0_i32 = arith.constant 0 : i32
    %c0_i32_0 = arith.constant 0 : i32
    %c0_i32_1 = arith.constant 0 : i32
    return %c0_i32, %c0_i32_0 : i32, i32
  }
  func.func @transform_5(%arg0: i32) -> (i32, i32) {
    %c0_i32 = arith.constant 0 : i32
    %c0_i32_0 = arith.constant 0 : i32
    %c0_i32_1 = arith.constant 0 : i32
    return %c0_i32, %c0_i32_0 : i32, i32
  }
  func.func @transform_6(%arg0: i32) -> (i32, i32, i32) {
    %c0_i32 = arith.constant 0 : i32
    %c0_i32_0 = arith.constant 0 : i32
    %c0_i32_1 = arith.constant 0 : i32
    return %arg0, %c0_i32, %c0_i32_0 : i32, i32, i32
  }
}

</mosaic_0001>

<bundles_post_ra>
// kernel: tpu_custom_call.1
= control target key start
LH: loop header
LB: loop body
LE: loop exit
PB: predicated region body
PF: predicated region fallthrough
CT: control target
= control target key end

     0   :  { %11 = vsyncpa [#allocation3], 0  ;;  %s1092_s0 = inlined_call_operand.hbm [shape: f32[2,8,32], index: 0, kind: input, shape index: {}]   ;;  %s1093_s1 = inlined_call_operand.vmem [shape: f32[2,1,32], index: 1, kind: input, shape index: {}]   ;;  %s1094_s2 = inlined_call_operand.hbm [shape: f32[32,128], index: 2, kind: input, shape index: {}]   ;;  %s1095_s3 = inlined_call_operand.hbm [shape: f32[32,128], index: 3, kind: input, shape index: {}]   ;;  %s1096_s4 = inlined_call_operand.vmem [shape: f32[1,128], index: 4, kind: input, shape index: {}]   ;;  %s1097_s5 = inlined_call_operand.vmem [shape: f32[1,128], index: 5, kind: input, shape index: {}]   ;;  %s1098_s6 = inlined_call_operand.vmem [shape: f32[2,8,1], index: 6, kind: output, shape index: {}]  }
   0x1   :  { %13 = vsyncpa [#allocation3 + $0x1], 0 }
   0x2   :  { %14 = vsyncpa [#allocation5], 0  ;;  %s902_s21 = smov 0   ;;  %s904_s22 = smov 0  }
   0x3   :  { %s906_s23 = smov 0   ;;  %s908_s24 = smov 0  }
   0x4 LB: > { %s921_s25 = sadd.s32 4294967295, %s857_s24   ;;  %p40_p0 = scmp.ne.s32.totalorder %s849_s22, %s845_s21  ;;  %s857_s24 = sphi %s908_s24, %s1113_s24   ;;  %s853_s23 = sphi %s906_s23, %s1112_s23   ;;  %s849_s22 = sphi %s904_s22, %s1111_s22   ;;  %s845_s21 = sphi %s902_s21, %s1110_s21  }
   0x5   : > { %p1099_p1 = scmp.eq.s32.totalorder %s921_s25, 0  ;;  %p603_p2 = scmp.ge.s32.totalorder %s857_s24, 1 }
   0x6   : > { %p187_p3 = scmp.lt.s32.totalorder %s857_s24, 3  ;;  %s859_s28 = smov [#allocation4]  }
   0x7   : > { %p929_p4 = por %p1099_p1, %p40_p0  ;;  %s199_s29 = sshll.u32 %s859_s28, 4  ;;  %s200_s29 = int_to_ptr.vmem [resolvable:$true] %s199_s29 }
   0x8   : > { %p933_p5 = pnand %p603_p2, %p187_p3  ;;  %s860_s7 = smov [#allocation6]  }
   0x9   : > { %s1102_s26 = scalar_select %p929_p4, 1, 0 }
   0xa   : > { %s1103_s27 = scalar_select %p933_p5, 1, 0 }
   0xb   : > { %p674_p6 = pneg %p933_p5  ;;  %s212_s8 = sshll.u32 %s860_s7, 4  ;;  %s945_s8 = int_to_ptr.vmem [resolvable:$true] %s212_s8 }
   0xc   : > { %s733_s11 = scalar_lea.hbm %s1094_s2, 512 }
   0xd   : > { %p941_p7 = pnand %p674_p6, %p1099_p1  ;;  %p734_p8 = scmp.ne.s32.totalorder %s1094_s2, %s733_s11 }
   0xe   : > { %p740_p12 = scmp.lt.u32.totalorder %s733_s11, %s1094_s2 }
   0xf   : > { %p735_p9 = pneg %p941_p7 }
  0x11   : > { %p736_p10 = pnand %p735_p9, %p734_p8 }
  0x13   : > { %p737_p11 = pneg %p736_p10 }
  0x15   : > { %p742_p13 = pnand %p740_p12, %p737_p11 }
  0x17   : > { %745 = shalt.err (!%p742_p13)
}
  0x18   : > { %s746_s16 = scalar_lea.vmem %s200_s29, 512  ;;  %p754_p6 = scmp.lt.s32.totalorder %s200_s29, %s200_s29 }
  0x19   : > { %p747_p0 = scmp.ne.s32.totalorder %s200_s29, %s746_s16  ;;  %p755_p1 = scmp.lt.s32.totalorder %s746_s16, %s746_s16 }
  0x1b   : > { %p749_p2 = pnand %p747_p0, %p735_p9  ;;  %p756_p4 = por %p755_p1, %p754_p6 }
  0x1d   : > { %p750_p3 = pneg %p749_p2 }
  0x1f   : > { %p757_p5 = pnand %p756_p4, %p750_p3 }
  0x21   : > { %760 = shalt.err (!%p757_p5)
}
  0x22   : > { %s861_s17 = smov 128   ;;  %s862_s18 = smov 8  }
  0x23   : > { %677 = dma.hbm_to_vmem [thread:$0]  (!%p941_p7), %s1094_s2, 512, %s200_s29, [#allocation5], %s861_s17, %s861_s17, %s862_s18  }
  0x24   : > { %s761_s7 = scalar_lea.hbm %s1095_s3, 512 }
  0x25   : > { %p762_p8 = scmp.ne.s32.totalorder %s1095_s3, %s761_s7  ;;  %p768_p5 = scmp.lt.u32.totalorder %s761_s7, %s1095_s3 }
  0x27   : > { %p764_p1 = pnand %p762_p8, %p735_p9 }
  0x29   : > { %p765_p4 = pneg %p764_p1 }
  0x2b   : > { %p770_p10 = pnand %p768_p5, %p765_p4 }
  0x2d   : > { %773 = shalt.err (!%p770_p10)
}
  0x2e   : > { %s774_s29 = scalar_lea.vmem %s945_s8, 512  ;;  %p782_p0 = scmp.lt.s32.totalorder %s945_s8, %s945_s8 }
  0x2f   : > { %p775_p11 = scmp.ne.s32.totalorder %s945_s8, %s774_s29  ;;  %p783_p2 = scmp.lt.s32.totalorder %s774_s29, %s774_s29 }
  0x31   : > { %p777_p12 = pnand %p775_p11, %p735_p9  ;;  %p784_p3 = por %p783_p2, %p782_p0 }
  0x33   : > { %p778_p13 = pneg %p777_p12 }
  0x35   : > { %p785_p6 = pnand %p784_p3, %p778_p13 }
  0x37   : > { %788 = shalt.err (!%p785_p6)
}
  0x38   : > { %680 = dma.hbm_to_vmem [thread:$0]  (!%p941_p7), %s1095_s3, 512, %s945_s8, [#allocation5], %s861_s17, %s861_s17, %s862_s18  }
  0x39   : > { %s995_s15 = sadd.s32 1, %s857_s24   ;;  %s27_s16 = sadd.s32 1, %s853_s23 }
  0x3a   : > { %s24_s30 = ssub.s32 %s857_s24, %s995_s15  ;;  %p34_p9 = scmp.ne.s32.totalorder %s853_s23, %s849_s22 }
  0x3b   : > { %p25_p8 = scmp.eq.s32.totalorder %s24_s30, 0  ;;  %p35_p1 = scmp.eq.s32.totalorder %s857_s24, 0 }
  0x3c   : > { %p687_p4 = scmp.lt.s32.totalorder %s857_s24, 2  ;;  %s232_s19 = sand.u32 1, %s853_s23  }
  0x3d   : > { %s1006_s20 = scalar_select %p25_p8, %s853_s23, %s27_s16  }
  0x3e   : > { %p36_p5 = por %p35_p1, %p34_p9  ;;  %s607_s21 = sshll.u32 %s232_s19, 3 }
  0x3f   : > { %s608_s28 = sshll.u32 %s857_s24, 7  ;;  %s236_s8 = scalar_lea.vmem [#allocation2], %s607_s21 }
  0x40   : > { %s1012_s10 = scalar_lea.hbm %s1092_s0, %s608_s28  ;;  %s243_s17 = sshll.u32 %s236_s8, 4  ;;  %s1018_s17 = int_to_ptr.vmem [resolvable:$true] %s243_s17 }
  0x41   : > { %p1014_p7 = pnand %p687_p4, %p36_p5  ;;  %s233_s24 = scalar_lea.sflag [#allocation3], %s232_s19 }
  0x42   : > { %s789_s11 = scalar_lea.hbm %s1012_s10, 128  ;;  %s794_s13 = scalar_lea.hbm %s1092_s0, 256 }
  0x43   : > { %p790_p10 = scmp.ne.s32.totalorder %s1012_s10, %s789_s11  ;;  %p791_p11 = pneg %p1014_p7 }
  0x44   : > { %p795_p0 = scmp.lt.u32.totalorder %s1012_s10, %s1092_s0  ;;  %p796_p2 = scmp.lt.u32.totalorder %s794_s13, %s789_s11 }
  0x45   : > { %p792_p12 = pnand %p791_p11, %p790_p10  ;;  %p798_p6 = scmp.lt.u32.totalorder %s789_s11, %s1012_s10 }
  0x46   : > { %p797_p3 = por %p796_p2, %p795_p0 }
  0x47   : > { %p793_p13 = pneg %p792_p12 }
  0x48   : > { %p799_p9 = por %p798_p6, %p797_p3 }
  0x4a   : > { %p800_p8 = pnand %p799_p9, %p793_p13 }
  0x4c   : > { %803 = shalt.err (!%p800_p8)
}
  0x4d   : > { %s804_s30 = scalar_lea.vmem %s1018_s17, 128  ;;  %s863_s19 = smov [#allocation2]  }
  0x4e   : > { %p805_p1 = scmp.ne.s32.totalorder %s1018_s17, %s804_s30  ;;  %s809_s21 = sshll.u32 %s863_s19, 4  ;;  %s810_s21 = int_to_ptr.vmem [resolvable:$false] %s809_s21 }
  0x4f   : > { %s811_s28 = scalar_lea.vmem %s810_s21, 256  ;;  %p812_p10 = scmp.lt.s32.totalorder %s1018_s17, %s810_s21 }
  0x50   : > { %p807_p4 = pnand %p805_p1, %p791_p11  ;;  %p813_p12 = scmp.lt.s32.totalorder %s811_s28, %s804_s30 }
  0x52   : > { %p808_p5 = pneg %p807_p4  ;;  %p814_p0 = por %p813_p12, %p812_p10 }
  0x54   : > { %p815_p2 = pnand %p814_p0, %p808_p5 }
  0x56   : > { %818 = shalt.err (!%p815_p2)
}
  0x57   : > { %684 = dma.hbm_to_vmem [thread:$0]  (!%p1014_p7), %s1012_s10, 128, %s1018_s17, %s233_s24  }
  0x58   : > { %p1106_p13 = scmp.ne.s32.totalorder %s1103_s27, 0 }
  0x59   : > { %s260_s7 = sand.u32 (!%p1106_p13), 1, %s849_s22   ;;  %p1107_p11 = scmp.ne.s32.totalorder (!%p1106_p13), %s1102_s26, 0 }
  0x5a   : > { %258 = sbr.rel (%p1106_p13) target bundleno = 528 (0x210), region = 44  ;;  %s1048_s9 = sshll.u32 (!%p1106_p13), %s260_s7, 3 }
  0x5b   : > { %s261_s8 = scalar_lea.sflag (!%p1106_p13), [#allocation3], %s260_s7  ;;  %s264_s11 = scalar_lea.vmem (!%p1106_p13), [#allocation2], %s1048_s9 }
  0x61   : > { %836 = dma.done.wait (%p1107_p11), %s261_s8, 128  }
  0x62   : > { %838 = vsyncadd (%p1107_p11), %s261_s8, 4294967168  ;;  %p1108_p3 = scmp.eq.s32.totalorder %s921_s25, 0 }
  0x64   : > { %840 = dma.done.wait (%p1108_p3), [#allocation5], 1024   ;;  %p1109_p7 = pmov %p1108_p3 }
  0x65   : > { %v864_v0 = vmov 0.0|0.0   ;;  %vm865_vm0 = vmmov 0   ;;  %v866_v1 = vmov 0.0   ;;  %p303_p6 = scmp.lt.s32.totalorder %s921_s25, 1  ;;  %v316_v2 = vld [vmem:[#allocation6] sm:$0xff]  ;;  %v317_v3 = vld [vmem:[#allocation6 + $0x8] sm:$0xff]  ;;  %v394_v16 = vlaneseq }
  0x66   : > { %842 = vsyncadd (%p1109_p7), [#allocation5], 4294966272  ;;  %652 = vmatprep.subr.bf16.mxu0 %v864_v0  ;;  %658 = vmatprep.subr.bf16.mxu1 %v864_v0  ;;  %v311_v4 = vld [vmem:[#allocation4] sm:$0xff]  ;;  %v653_v5 = vpack.c.bf16 %v317_v3, %v316_v2  ;;  %v312_v6 = vld [vmem:[#allocation4 + $0x8] sm:$0xff]  ;;  %vm320_vm1 = vcmask 261120   ;;  %vm507_vm2 = vcmask 7168  }
  0x67   : > { %638 = vmatprep.mubr.msk.f32.mxu0 %vm865_vm0, %v866_v1  ;;  %649 = vmatprep.mubr.msk.f32.mxu1 %vm865_vm0, %v866_v1  ;;  %s1115_s25 = smov (!%p303_p6, %s921_s25), 1  ;;  %v318_v7 = vld [vmem:[#allocation6 + $0x10] sm:$0xff]  ;;  %v319_v8 = vld [vmem:[#allocation6 + $0x18] sm:$0xff]  ;;  %v659_v9 = vpack.c.bf16 %v312_v6, %v311_v4  ;;  %v395_v17 = vshrl.u32 %v394_v16, 7 }
  0x68   : > { %v313_v10 = vld [vmem:[#allocation4 + $0x10] sm:$0xff]  ;;  %v314_v11 = vld [vmem:[#allocation4 + $0x18] sm:$0xff]  ;;  %654 = vmatpush3.bf16.msra.mxu0 %v653_v5  ;;  %v656_v12 = vpack.c.bf16 %v319_v8, %v318_v7  ;;  %s305_s10 = scalar_lea.vmem %s1093_s1, %s1115_s25  ;;  %s613_s29 = sshll.u32 %s1115_s25, 3 }
  0x69   : > { %660 = vmatpush3.bf16.msra.mxu1 %v659_v9  ;;  %655 = vmatprep.subr.bf16.mxu0 %v864_v0  ;;  %v662_v13 = vpack.c.bf16 %v314_v11, %v313_v10  ;;  %v315_v14 = vld [vmem:[%s305_s10] sm:$0x1]  ;;  %v396_v18 = vsub.s32 0, %v395_v17  ;;  %s309_s16 = scalar_lea.vmem %s1098_s6, %s613_s29 }
  0x6a   : > { %661 = vmatprep.subr.bf16.mxu1 %v864_v0  ;;  %v310_v15 = vld [vmem:[%s264_s11] sm:$0xff] }
  0x6b   : > { %v616_v24 = vld [vmem:[%s1096_s4] ss:$0 sm:$0xff] }
  0x6c   : > { %657 = vmatpush3.bf16.msra.mxu0 %v656_v12  ;;  %v617_v27 = vld [vmem:[%s1097_s5] ss:$0 sm:$0xff] }
  0x6d   : > { %663 = vmatpush3.bf16.msra.mxu1 %v662_v13 }
  0x6f   : > { %639 = vmatmul.mubr.msk.f32.vlgmr.msra.gmra.mrb[0].mxu0 %vm320_vm1, %v315_v14 }
  0x70   : > { %650 = vmatmul.mubr.msk.f32.vlgmr.msra.gmra.mrb[0].mxu1 %vm320_vm1, %v310_v15 }
 0x142   : > { %v390_v19 = vpop.f32.mrb[0].mxu0 }
 0x143   : > { %v397_v20 = vrot.slane %v390_v19, %v396_v18  ;;  %v640_v21 = vpop.f32.mrb[1].mxu0  ;;  %v467_v22 = vpop.f32.mrb[0].mxu1 }
 0x144   : > { %v651_v23 = vpop.f32.mrb[1].mxu1 }
 0x145   : > { %v468_v25 = vadd.f32 %v467_v22, %v397_v20 }
 0x147   : > { %v478_v26 = vadd.f32 %v616_v24, %v468_v25 }
 0x149   : > { %v479_v28 = vmax.f32 %v478_v26, 0.0 }
 0x14b   : > { %v487_v29 = vmul.f32 %v617_v27, %v479_v28 }
 0x14d   : > { %488 = vadd.xlane.f32.xlu0 %v487_v29 }
 0x1da   : > { %v489_v30 = vpop.xlane.xlu0 %488 }
 0x1db   : > { %v490_v31 = vrot.slane %v489_v30, 4 }
 0x1dd   : > { %v491_v32 = vmax.f32 %v489_v30, %v490_v31 }
 0x1df   : > { %v492_v33 = vrot.slane %v491_v32, 2 }
 0x1e1   : > { %v493_v34 = vmax.f32 %v491_v32, %v492_v33 }
 0x1e3   : > { %v494_v35 = vrot.slane %v493_v34, 1 }
 0x1e5   : > { %v495_v36 = vmax.f32 %v493_v34, %v494_v35 }
 0x1e7   : > { %v496_v37 = vsub.f32 %v489_v30, %v495_v36 }
 0x1e9   : > { %v497_v38 = vmul.f32 1.442695, %v496_v37 }
 0x1eb   : > { %729 = vpow2.f32 %v497_v38 }
 0x1f5   : > { %v730_v39 = vpop.eup %729 }
 0x1f6   : > { %v499_v40 = vrot.slane %v730_v39, 4 }
 0x1f8   : > { %v500_v41 = vadd.f32 %v730_v39, %v499_v40 }
 0x1fa   : > { %v501_v42 = vrot.slane %v500_v41, 2 }
 0x1fc   : > { %v502_v43 = vadd.f32 %v501_v42, %v500_v41 }
 0x1fe   : > { %v503_v44 = vrot.slane %v502_v43, 1 }
 0x200   : > { %v504_v45 = vadd.f32 %v503_v44, %v502_v43 }
 0x202   : > { %731 = vrcp.f32 %v504_v45 }
 0x20c   : > { %v732_v46 = vpop.eup %731 }
 0x20d   : > { %v506_v47 = vmul.f32 %v732_v46, %v730_v39 }
 0x20f   : > { %508 = vst.msk [vmem:[%s309_s16] sm:$0xff] %vm507_vm2, %v506_v47 }
 0x210 PF: > { %p17_p9 = scmp.ge.s32.totalorder %s995_s15, 4   ;;  %s1110_s21 = smov %s849_s22 }
 0x211   : > { %s1111_s22 = smov %s853_s23  ;;  %s1112_s23 = smov %s1006_s20 }
 0x212   : > { %s1113_s24 = smov %s995_s15  ;;  %19 = sbr.rel (!%p17_p9) target bundleno = 4 (0x4), region = 95 }
 0x219   :  { %528 = vsyncpa [#allocation3], 1 }
 0x21a   :  { %530 = vsyncpa [#allocation3 + $0x1], 1 }
 0x21b   :  { %531 = vsyncpa [#allocation5], 1 }

</bundles_post_ra>
